<compile_context>
chip_gen: v7x
topology: tpu7x:2x2x1
jax: 0.10.0
libtpu: 0.0.40
codegen_flags: <defaults>
</compile_context>

<pallas_src>
import math
from functools import partial

import jax
import jax.numpy as jnp
import numpy as np
from jax.experimental import pallas as pl
from jax.experimental.pallas import tpu as pltpu


def _round_up(x, m):
    return ((x + m - 1) // m) * m


def _pick_tile_rows(rows, max_rows):
    """Largest multiple of 8 that divides `rows` and fits `max_rows`, preferring
    >= 2 grid steps (v7x megacore sharding) when that keeps the step count low."""
    m = rows // 8
    max_d = max(max_rows // 8, 1)
    divisors = [d for d in range(1, m + 1) if m % d == 0 and d <= max_d]
    best = max(divisors)
    par = [d for d in divisors if m // d >= 2]
    if par:
        best_par = max(par)
        if m // best_par <= max(4, m // best):   # don't trade one step for dozens
            return 8 * best_par
    return 8 * best


# --------------------------- kernels -----------------------------------------


def _packed_kernel(t_ref, fm_ref, phase_ref, out_ref):
    """Lane-packed path: `pack = 128 // D` batch rows per 128-lane output row.

    t_ref:     (TB, pack)  f32 timesteps; column g holds batch row r*pack + g
    fm_ref:    (pack, 128) f32; row g = frequencies on lane group g, 0 elsewhere
    phase_ref: (1, 128)    f32; 0 on sin lanes, pi/2 on cos lanes
    out_ref:   (TB, 128)   packed embeddings (reshaped to (TB*pack, D) outside)
    """
    t = t_ref[...]
    fm = fm_ref[...]
    pack = fm.shape[0]
    # emb[r, l] = t[r, l // D] * freq[l % D]; built as `pack` VPU broadcast
    # multiply-adds against the resident masked-frequency rows (no MXU, no
    # lane gather, no lane shuffle).
    emb = t[:, 0:1] * fm[0:1, :]
    for g in range(1, pack):
        emb = emb + t[:, g:g + 1] * fm[g:g + 1, :]
    # cos(x) == sin(x + pi/2): one EUP transcendental per element and a single
    # full-width unmasked store of the assembled 128-lane row.
    out_ref[...] = jnp.sin(emb + phase_ref[...]).astype(out_ref.dtype)


def _wide_kernel(t_ref, freq_ref, phase_ref, out_ref):
    """Wide path (D >= 128 or D does not divide 128).

    t_ref:     (TB, 1)  f32 timesteps
    freq_ref:  (1, D)   f32 = [f_0..f_{h-1}, f_0..f_{h-1}]   (resident)
    phase_ref: (1, D)   f32 = [0]*h + [pi/2]*h               (resident)
    out_ref:   (TB, D)  [:, :h] = sin, [:, h:] = cos — written with ONE store.
    """
    emb = t_ref[...] * freq_ref[...]                  # VPU broadcast outer product
    out_ref[...] = jnp.sin(emb + phase_ref[...]).astype(out_ref.dtype)


# --------------------------- wrapper ------------------------------------------


@partial(jax.jit, static_argnums=(1, 2, 3))
def _forward(timesteps, embedding_dim, block_rows, out_dtype):
    assert embedding_dim % 2 == 0, "embedding_dim must be even"
    half = embedding_dim // 2
    assert half > 1, "embedding_dim must be >= 4 (half_dim - 1 division)"

    b = timesteps.shape[0]
    d = embedding_dim
    t = timesteps.astype(jnp.float32)
    out_bytes = np.dtype(out_dtype).itemsize

    # Frequencies with the exact reference formula, computed once in XLA and
    # kept resident in VMEM across all grid steps (constant index_map).
    scale = math.log(10000.0) / (half - 1)
    freq = jnp.exp(jnp.arange(half, dtype=jnp.float32) * -scale)        # (half,)
    freq_row = jnp.concatenate([freq, freq])                            # (d,)
    phase_row = jnp.concatenate(
        [jnp.zeros((half,), jnp.float32),
         jnp.full((half,), math.pi / 2.0, jnp.float32)])                # (d,)

    if d < 128 and 128 % d == 0:
        # ---- lane-packed path: pack consecutive batch rows per 128-lane row --
        pack = 128 // d
        padded_b = _round_up(b, 8 * pack)        # minimal pad: sublane(8) x pack
        if padded_b != b:
            t = jnp.pad(t, (0, padded_b - b))
        rows = padded_b // pack
        t2 = t.reshape(rows, pack)

        freq_lane = jnp.tile(freq_row, pack)                            # (128,)
        phase = jnp.tile(phase_row, pack).reshape(1, 128)               # (1,128)
        group = jnp.arange(128) // d
        fm = jnp.where(group[None, :] == jnp.arange(pack)[:, None],
                       freq_lane[None, :], 0.0).astype(jnp.float32)     # (pack,128)

        tb = _pick_tile_rows(rows, block_rows)
        cost = pl.CostEstimate(
            flops=2 * rows * 128 * pack,
            transcendentals=rows * 128,
            bytes_accessed=4 * (rows * pack + (pack + 1) * 128) + rows * 128 * out_bytes,
        )
        out = pl.pallas_call(
            _packed_kernel,
            out_shape=jax.ShapeDtypeStruct((rows, 128), out_dtype),
            grid=(rows // tb,),
            in_specs=[
                pl.BlockSpec((tb, pack), lambda i: (i, 0)),
                pl.BlockSpec((pack, 128), lambda i: (0, 0)),   # resident in VMEM
                pl.BlockSpec((1, 128), lambda i: (0, 0)),      # resident in VMEM
            ],
            out_specs=pl.BlockSpec((tb, 128), lambda i: (i, 0)),
            compiler_params=pltpu.CompilerParams(
                dimension_semantics=("parallel",),
                allow_input_fusion=[True, False, False],
            ),
            cost_estimate=cost,
        )(t2, fm, phase)
        out = out.reshape(padded_b, d)           # row-major compatible: free view
    else:
        # ---- wide path -------------------------------------------------------
        padded_b = _round_up(b, 8)               # minimal pad: sublane tile only
        if padded_b != b:
            t = jnp.pad(t, (0, padded_b - b))
        t2 = t.reshape(padded_b, 1)
        freq2 = freq_row.reshape(1, d)
        phase2 = phase_row.reshape(1, d)

        tb = _pick_tile_rows(padded_b, block_rows)
        cost = pl.CostEstimate(
            flops=2 * padded_b * d,
            transcendentals=padded_b * d,
            bytes_accessed=4 * (padded_b + 2 * d) + padded_b * d * out_bytes,
        )
        out = pl.pallas_call(
            _wide_kernel,
            out_shape=jax.ShapeDtypeStruct((padded_b, d), out_dtype),
            grid=(padded_b // tb,),
            in_specs=[
                pl.BlockSpec((tb, 1), lambda i: (i, 0)),
                pl.BlockSpec((1, d), lambda i: (0, 0)),        # resident in VMEM
                pl.BlockSpec((1, d), lambda i: (0, 0)),        # resident in VMEM
            ],
            out_specs=pl.BlockSpec((tb, d), lambda i: (i, 0)),
            compiler_params=pltpu.CompilerParams(
                dimension_semantics=("parallel",),
                allow_input_fusion=[True, False, False],
            ),
            cost_estimate=cost,
        )(t2, freq2, phase2)

    return out if padded_b == b else out[:b]


def sinusoidal_position_embeddings(timesteps, embedding_dim, block_rows=1024,
                                   out_dtype=jnp.float32):
    """JAX/Pallas equivalent of SinusoidalPositionEmbeddings.forward.

    timesteps: (B,) array (any real dtype); returns (B, embedding_dim) out_dtype.
    """
    return _forward(timesteps, embedding_dim, block_rows, out_dtype)


def _reference(timesteps, embedding_dim):
    """Pure-JAX reference mirroring the PyTorch forward exactly."""
    half_dim = embedding_dim // 2
    emb = math.log(10000.0) / (half_dim - 1)
    emb = jnp.exp(jnp.arange(half_dim, dtype=jnp.float32) * -emb)
    emb = timesteps.astype(jnp.float32)[:, None] * emb[None, :]
    return jnp.concatenate([jnp.sin(emb), jnp.cos(emb)], axis=-1)


if __name__ == "__main__":
    key = jax.random.PRNGKey(0)

    # Tolerance note: timesteps go up to ~1e3, so f32 range reduction inside
    # sin/cos plus the sin(x + pi/2) == cos(x) rewrite give ~1e-4 differences
    # vs the XLA reference; 2e-3 absolute tolerance is ample yet still tight
    # for values in [-1, 1].
    tol = dict(atol=2e-3, rtol=1e-5)

    # Case 1: lane-packed path (embedding_dim=32 -> 4 batch rows per 128-lane row).
    embedding_dim = 32
    batch = 8
    timesteps = jax.random.randint(key, (batch,), 0, 1000).astype(jnp.float32)
    out = jax.block_until_ready(
        sinusoidal_position_embeddings(timesteps, embedding_dim))
    ref = _reference(timesteps, embedding_dim)
    assert out.shape == (batch, embedding_dim)
    assert jnp.allclose(out, ref, **tol), "mismatch vs reference (packed)"

    # Case 2: ragged batch (exercises the minimal-pad + trailing-slice path).
    batch2 = 5
    timesteps2 = jax.random.randint(
        jax.random.PRNGKey(1), (batch2,), 0, 1000).astype(jnp.float32)
    out2 = jax.block_until_ready(
        sinusoidal_position_embeddings(timesteps2, embedding_dim))
    ref2 = _reference(timesteps2, embedding_dim)
    assert out2.shape == (batch2, embedding_dim)
    assert jnp.allclose(out2, ref2, **tol), "mismatch vs reference (ragged)"

    # Case 3: wide path with a non-lane-aligned half (D=192 -> half=96) and a
    # 2-step "parallel" grid; still a single unmasked store per tile.
    batch3, dim3 = 48, 192
    timesteps3 = jax.random.randint(
        jax.random.PRNGKey(2), (batch3,), 0, 1000).astype(jnp.float32)
    out3 = jax.block_until_ready(
        sinusoidal_position_embeddings(timesteps3, dim3))
    ref3 = _reference(timesteps3, dim3)
    assert out3.shape == (batch3, dim3)
    assert jnp.allclose(out3, ref3, **tol), "mismatch vs reference (wide)"

    print("KERNEL_OK")
</pallas_src>

<mosaic_0001>
module attributes {stable_mosaic.version = 11 : i64} {
  func.func @_packed_kernel(%arg0: i32, %arg1: memref<8x4xf32, #tpu.memory_space<vmem>>, %arg2: memref<4x128xf32, #tpu.memory_space<vmem>>, %arg3: memref<1x128xf32, #tpu.memory_space<vmem>>, %arg4: memref<8x128xf32, #tpu.memory_space<vmem>>) attributes {dimension_semantics = [#tpu.dimension_semantics<parallel>], iteration_bounds = array<i64: 1>, scalar_prefetch = 0 : i64, scratch_operands = 0 : i64, tpu.core_type = #tpu.core_type<tc>, window_params = [{transform_indices = @transform_0, window_bounds = array<i64: 8, 4>}, {pipeline_mode = #tpu.pipeline_mode<synchronous>, transform_indices = @transform_1, window_bounds = array<i64: 4, 128>}, {pipeline_mode = #tpu.pipeline_mode<synchronous>, transform_indices = @transform_2, window_bounds = array<i64: 1, 128>}, {transform_indices = @transform_3, window_bounds = array<i64: 8, 128>}]} {
    %c0 = arith.constant 0 : index
    %c0_0 = arith.constant 0 : index
    %0 = vector.load %arg1[%c0, %c0_0] : memref<8x4xf32, #tpu.memory_space<vmem>>, vector<8x4xf32>
    %c0_1 = arith.constant 0 : index
    %c0_2 = arith.constant 0 : index
    %1 = vector.load %arg2[%c0_1, %c0_2] : memref<4x128xf32, #tpu.memory_space<vmem>>, vector<4x128xf32>
    %2 = vector.extract_strided_slice %0 {offsets = [0, 0], sizes = [8, 1], strides = [1, 1]} : vector<8x4xf32> to vector<8x1xf32>
    %3 = vector.extract_strided_slice %1 {offsets = [0, 0], sizes = [1, 128], strides = [1, 1]} : vector<4x128xf32> to vector<1x128xf32>
    %4 = vector.broadcast %2 : vector<8x1xf32> to vector<8x128xf32>
    %5 = vector.broadcast %3 : vector<1x128xf32> to vector<8x128xf32>
    %6 = arith.mulf %4, %5 : vector<8x128xf32>
    %7 = vector.extract_strided_slice %0 {offsets = [0, 1], sizes = [8, 1], strides = [1, 1]} : vector<8x4xf32> to vector<8x1xf32>
    %8 = vector.extract_strided_slice %1 {offsets = [1, 0], sizes = [1, 128], strides = [1, 1]} : vector<4x128xf32> to vector<1x128xf32>
    %9 = vector.broadcast %7 : vector<8x1xf32> to vector<8x128xf32>
    %10 = vector.broadcast %8 : vector<1x128xf32> to vector<8x128xf32>
    %11 = arith.mulf %9, %10 : vector<8x128xf32>
    %12 = arith.addf %6, %11 : vector<8x128xf32>
    %13 = vector.extract_strided_slice %0 {offsets = [0, 2], sizes = [8, 1], strides = [1, 1]} : vector<8x4xf32> to vector<8x1xf32>
    %14 = vector.extract_strided_slice %1 {offsets = [2, 0], sizes = [1, 128], strides = [1, 1]} : vector<4x128xf32> to vector<1x128xf32>
    %15 = vector.broadcast %13 : vector<8x1xf32> to vector<8x128xf32>
    %16 = vector.broadcast %14 : vector<1x128xf32> to vector<8x128xf32>
    %17 = arith.mulf %15, %16 : vector<8x128xf32>
    %18 = arith.addf %12, %17 : vector<8x128xf32>
    %19 = vector.extract_strided_slice %0 {offsets = [0, 3], sizes = [8, 1], strides = [1, 1]} : vector<8x4xf32> to vector<8x1xf32>
    %20 = vector.extract_strided_slice %1 {offsets = [3, 0], sizes = [1, 128], strides = [1, 1]} : vector<4x128xf32> to vector<1x128xf32>
    %21 = vector.broadcast %19 : vector<8x1xf32> to vector<8x128xf32>
    %22 = vector.broadcast %20 : vector<1x128xf32> to vector<8x128xf32>
    %23 = arith.mulf %21, %22 : vector<8x128xf32>
    %24 = arith.addf %18, %23 : vector<8x128xf32>
    %c0_3 = arith.constant 0 : index
    %c0_4 = arith.constant 0 : index
    %25 = vector.load %arg3[%c0_3, %c0_4] : memref<1x128xf32, #tpu.memory_space<vmem>>, vector<1x128xf32>
    %26 = vector.broadcast %25 : vector<1x128xf32> to vector<8x128xf32>
    %27 = arith.addf %24, %26 : vector<8x128xf32>
    %28 = math.sin %27 : vector<8x128xf32>
    %c0_5 = arith.constant 0 : index
    %c0_6 = arith.constant 0 : index
    %29 = vector.load %arg4[%c0_5, %c0_6] : memref<8x128xf32, #tpu.memory_space<vmem>>, vector<8x128xf32>
    tpu.vector_store %arg4[%c0_5, %c0_6], %28 {strides = array<i32>} : memref<8x128xf32, #tpu.memory_space<vmem>>, vector<8x128xf32>,
    return
  }
  func.func @transform_0(%arg0: i32) -> (i32, i32) {
    %c0_i32 = arith.constant 0 : i32
    %c0_i32_0 = arith.constant 0 : i32
    return %arg0, %c0_i32 : i32, i32
  }
  func.func @transform_1(%arg0: i32) -> (i32, i32) {
    %c0_i32 = arith.constant 0 : i32
    %c0_i32_0 = arith.constant 0 : i32
    %c0_i32_1 = arith.constant 0 : i32
    return %c0_i32, %c0_i32_0 : i32, i32
  }
  func.func @transform_2(%arg0: i32) -> (i32, i32) {
    %c0_i32 = arith.constant 0 : i32
    %c0_i32_0 = arith.constant 0 : i32
    %c0_i32_1 = arith.constant 0 : i32
    return %c0_i32, %c0_i32_0 : i32, i32
  }
  func.func @transform_3(%arg0: i32) -> (i32, i32) {
    %c0_i32 = arith.constant 0 : i32
    %c0_i32_0 = arith.constant 0 : i32
    return %arg0, %c0_i32 : i32, i32
  }
}

</mosaic_0001>

<bundles_post_ra>
// kernel: tile.12
= control target key start
LH: loop header
LB: loop body
LE: loop exit
PB: predicated region body
PF: predicated region fallthrough
CT: control target
= control target key end

     0   :  { %s22_s0 = inlined_call_operand.vmem [shape: f32[32], index: 0, kind: input, shape index: {}]   ;;  %s23_s1 = inlined_call_operand.vmem [shape: f32[4,32], index: 1, kind: output, shape index: {}]  }
   0x1   :  { %v4_v0 = vld [vmem:[%s22_s0] ss:$0 sm:$0xff] }
   0x2   :  { %5 = vst [vmem:[%s23_s1] sm:$0xf] %v4_v0 }

// kernel: tile.16
= control target key start
LH: loop header
LB: loop body
LE: loop exit
PB: predicated region body
PF: predicated region fallthrough
CT: control target
= control target key end

     0   :  { %vm7_vm0 = vcmask 261120   ;;  %s37_s8 = smov 32   ;;  %s38_s9 = smov 64   ;;  %vm13_vm1 = vcmask 1048320   ;;  %vm19_vm2 = vcmask 785920   ;;  %vm25_vm3 = vcmask 523520   ;;  %s55_s0 = inlined_call_operand.vmem [shape: f32[4,32], index: 0, kind: input, shape index: {}]   ;;  %s56_s1 = inlined_call_operand.vmem [shape: f32[1,128], index: 1, kind: output, shape index: {}]  }
   0x1   :  { %v4_v0 = vld [vmem:[%s55_s0] sm:$0xf]  ;;  %s36_s0 = smov 96  }
   0x2   :  { %5 = vst [vmem:[#allocation1] sm:$0xf] %v4_v0 }
   0x9   :  { %v10_v1 = vld [vmem:[#allocation1 + $0x3] sm:$0x1]   ;;  %v22_v2 = vld [vmem:[#allocation1 + $0x1] sm:$0x1]   ;;  %v6_v3 = vld [vmem:[#allocation1] sm:$0x1]  }
   0xa   :  { %11 = vrot.lane.b32.xlu0 %v10_v1, %s36_s0  ;;  %23 = vrot.lane.b32.xlu1 %v22_v2, %s37_s8  ;;  %v16_v4 = vld [vmem:[#allocation1 + $0x2] sm:$0x1]   ;;  %8 = vst.msk [vmem:[#allocation0] sm:$0x1] %vm7_vm0, %v6_v3  }
   0xe   :  { %17 = vrot.lane.b32.xlu0 %v16_v4, %s38_s9 }
  0x7c   :  { %v12_v5 = vpop.permute.xlu0 %11   ;;  %v24_v6 = vpop.permute.xlu1 %23  }
  0x7d   :  { %14 = vst.msk [vmem:[#allocation0] sm:$0x1] %vm13_vm1, %v12_v5  }
  0x80   :  { %v18_v7 = vpop.permute.xlu0 %17  }
  0x81   :  { %20 = vst.msk [vmem:[#allocation0] sm:$0x1] %vm19_vm2, %v18_v7  }
  0x82   :  { %26 = vst.msk [vmem:[#allocation0] sm:$0x1] %vm25_vm3, %v24_v6  }
  0x89   :  { %v30_v8 = vld [vmem:[#allocation0] sm:$0x1] }
  0x8a   :  { %32 = vst [vmem:[%s56_s1] sm:$0x1] %v30_v8 }

// kernel: _forward.1
= control target key start
LH: loop header
LB: loop body
LE: loop exit
PB: predicated region body
PF: predicated region fallthrough
CT: control target
= control target key end

     0   :  { %v201_v0 = vmov 0   ;;  %v202_v2 = vmov 2   ;;  %v203_v3 = vmov 1   ;;  %v204_v4 = vmov 3   ;;  %s264_s0 = inlined_call_operand.vmem [shape: f32[8,4], index: 0, kind: input, shape index: {}]   ;;  %s265_s1 = inlined_call_operand.vmem [shape: f32[4,128], index: 1, kind: input, shape index: {}]   ;;  %s266_s2 = inlined_call_operand.vmem [shape: f32[1,128], index: 2, kind: input, shape index: {}]   ;;  %s267_s3 = inlined_call_operand.vmem [shape: f32[8,128], index: 3, kind: output, shape index: {}]  }
   0x1   :  { %192 = vset.pattern.permute.xlu0 %v201_v0  ;;  %v14_v1 = vld [vmem:[%s264_s0] sm:$0xff]  ;;  %194 = vset.pattern.permute.xlu1 %v202_v2  ;;  %v21_v5 = vlaneseq  ;;  %v205_v39 = vmov 683565275   ;;  %v206_v41 = vmov 2475754826  }
   0x2   :  { %18 = vperm.xlu0 %192, %v14_v1   ;;  %37 = vperm.xlu1 %194, %v14_v1   ;;  %v15_v9 = vld [vmem:[%s265_s1] sm:$0xf]  ;;  %v207_v44 = vmov 2131351028   ;;  %v208_v47 = vmov 2102212464  }
   0x3   :  { %v22_v6 = vshrl.u32 %v21_v5, 7  ;;  %v173_v26 = vld [vmem:[%s266_s2] ss:$0 sm:$0xff]  ;;  %v209_v50 = vmov 920167782  }
   0x4   :  { %v210_v53 = vmov 1326507024  }
   0x5   :  { %v23_v7 = vsub.s32 0, %v22_v6  ;;  %v32_v8 = vsub.s32 1, %v22_v6  ;;  %v42_v11 = vsub.s32 2, %v22_v6  ;;  %v52_v13 = vsub.s32 3, %v22_v6 }
   0x6   :  { %193 = vset.pattern.permute.xlu0 %v203_v3  ;;  %195 = vset.pattern.permute.xlu1 %v204_v4 }
   0x7   :  { %27 = vperm.xlu0 %193, %v14_v1   ;;  %47 = vperm.xlu1 %195, %v14_v1   ;;  %v24_v14 = vrot.slane %v15_v9, %v23_v7  ;;  %v33_v15 = vrot.slane %v15_v9, %v32_v8  ;;  %v43_v16 = vrot.slane %v15_v9, %v42_v11 }
   0x8   :  { %v53_v17 = vrot.slane %v15_v9, %v52_v13 }
   0xb   :  { %196 = vset.pattern.permute.xlu0 %v204_v4 }
  0x81   :  { %v19_v10 = vpop.permute.xlu0 %18  ;;  %v38_v12 = vpop.permute.xlu1 %37 }
  0x82   :  { %v25_v20 = vmul.f32 %v24_v14, %v19_v10  ;;  %v44_v22 = vmul.f32 %v43_v16, %v38_v12 }
  0x86   :  { %v28_v18 = vpop.permute.xlu0 %27  ;;  %v48_v19 = vpop.permute.xlu1 %47 }
  0x87   :  { %v34_v21 = vmul.f32 %v33_v15, %v28_v18  ;;  %v54_v24 = vmul.f32 %v53_v17, %v48_v19 }
  0x89   :  { %v35_v23 = vadd.f32 %v34_v21, %v25_v20 }
  0x8b   :  { %v45_v25 = vadd.f32 %v44_v22, %v35_v23 }
  0x8d   :  { %v55_v27 = vadd.f32 %v54_v24, %v45_v25 }
  0x8f   :  { %v240_v28 = vadd.f32 %v173_v26, %v55_v27 }
  0x91   :  { %v67_v29 = vand.u32 2139095040, %v240_v28  ;;  %v64_v33 = vand.u32 2147483647, %v240_v28  ;;  %vm66_vm7 = vcmp.lt.s32.totalorder %v240_v28, 0  ;;  %vm156_vm12 = vweird.f32 %v240_v28 }
  0x93   :  { %v68_v30 = vshrl.u32 %v67_v29, 23  ;;  %v71_v36 = vand.u32 8388607, %v64_v33  ;;  %vm65_vm8 = vcmp.le.f32.partialorder %v64_v33, 0.7853982 }
  0x95   :  { %v174_v31 = vadd.s32 4294967169, %v68_v30  ;;  %v72_v55 = vor.u32 8388608, %v71_v36 }
  0x97   :  { %v74_v32 = vadd.s32 1, %v174_v31  ;;  %v112_v5 = vshll.u32 %v72_v55, 8 }
  0x99   :  { %vm75_vm0 = vcmp.gt.s32.totalorder %v74_v32, 0 }
  0x9a   :  { %v76_v34 = vsel %vm75_vm0, %v74_v32, 0 }
  0x9b   :  { %v78_v35 = vand.u32 31, %v76_v34  ;;  %v77_v38 = vshrl.u32 %v76_v34, 5 }
  0x9d   :  { %v79_v37 = vsub.s32 32, %v78_v35  ;;  %v81_v40 = vshll.u32 %v205_v39, %v78_v35  ;;  %v84_v42 = vshll.u32 %v206_v41, %v78_v35  ;;  %v87_v46 = vshll.u32 %v207_v44, %v78_v35 }
  0x9e   :  { %v90_v49 = vshll.u32 %v208_v47, %v78_v35  ;;  %v93_v52 = vshll.u32 %v209_v50, %v78_v35  ;;  %vm96_vm1 = vcmp.lt.s32.totalorder %v77_v38, 1  ;;  %vm99_vm2 = vcmp.lt.s32.totalorder %v77_v38, 4 }
  0x9f   :  { %v82_v43 = vshrl.u32 %v206_v41, %v79_v37  ;;  %v85_v45 = vshrl.u32 %v207_v44, %v79_v37  ;;  %v88_v48 = vshrl.u32 %v208_v47, %v79_v37  ;;  %v91_v51 = vshrl.u32 %v209_v50, %v79_v37 }
  0xa0   :  { %v94_v54 = vshrl.u32 %v210_v53, %v79_v37  ;;  %v80_v0 = vshrl.u32 %v205_v39, %v79_v37  ;;  %vm98_vm3 = vcmp.lt.s32.totalorder %v77_v38, 3  ;;  %vm97_vm4 = vcmp.lt.s32.totalorder %v77_v38, 2 }
  0xa1   :  { %v83_v56 = vor.u32 %v82_v43, %v81_v40  ;;  %v86_v57 = vor.u32 %v85_v45, %v84_v42  ;;  %v89_v58 = vor.u32 %v88_v48, %v87_v46  ;;  %v92_v59 = vor.u32 %v91_v51, %v90_v49 }
  0xa2   :  { %v95_v60 = vor.u32 %v94_v54, %v93_v52 }
  0xa3   :  { %v101_v61 = vsel %vm99_vm2, %v89_v58, 2102212464  ;;  %v104_v62 = vsel %vm96_vm1, %v83_v56, %v86_v57  ;;  %v108_v63 = vsel %vm96_vm1, %v86_v57, %v89_v58  ;;  %v105_v1 = vsel %vm99_vm2, %v92_v59, 920167782 }
  0xa4   :  { %v109_v2 = vsel %vm99_vm2, %v95_v60, 1326507024  ;;  %v106_v3 = vsel %vm98_vm3, %v89_v58, %v105_v1  ;;  %v100_v6 = vsel %vm96_vm1, %v80_v0, %v83_v56  ;;  %v102_v7 = vsel %vm98_vm3, %v86_v57, %v101_v61 }
  0xa5   :  { %v110_v4 = vsel %vm98_vm3, %v92_v59, %v109_v2  ;;  %v107_v8 = vsel %vm97_vm4, %v104_v62, %v106_v3  ;;  %v103_v14 = vsel %vm97_vm4, %v100_v6, %v102_v7 }
  0xa6   :  { %v111_v9 = vsel %vm97_vm4, %v108_v63, %v110_v4  ;;  %v249_v12 = vmul.u32.u64.low %v112_v5, %v107_v8  ;;  %v250_v13 = vmul.u32.u64.high %v112_v5, %v107_v8, %v249_v12  ;;  %v119_v16 = vmul.u32 %v112_v5, %v103_v14 }
  0xa7   :  { %v246_v10 = vmul.u32.u64.low %v112_v5, %v111_v9  ;;  %v247_v11 = vmul.u32.u64.high %v112_v5, %v111_v9, %v246_v10 }
  0xa8   :  { %v122_v15 = vadd.s32 1, %v250_v13 }
  0xa9   :  { %vm121_vm5 = vc.u32 %v247_v11, %v249_v12  ;;  %v120_v29 = vadd.s32 %v249_v12, %v247_v11 }
  0xaa   :  { %v123_v17 = vsel %vm121_vm5, %v122_v15, %v250_v13 }
  0xab   :  { %v124_v18 = vadd.s32 %v123_v17, %v119_v16 }
  0xad   :  { %v125_v19 = vadd.s32 536870912, %v124_v18 }
  0xaf   :  { %v126_v20 = vshrl.u32 %v125_v19, 30 }
  0xb1   :  { %v127_v21 = vshll.u32 %v126_v20, 30  ;;  %v150_v42 = vsub.s32 4, %v126_v20 }
  0xb3   :  { %v128_v22 = vsub.s32 %v124_v18, %v127_v21  ;;  %v151_v45 = vsel %vm66_vm7, %v150_v42, %v126_v20 }
  0xb4   :  { %v153_v47 = vsel %vm65_vm8, 0, %v151_v45 }
  0xb5   :  { %v130_v23 = vsub.s32 0, %v128_v22  ;;  %v157_v48 = vadd.s32 3, %v153_v47 }
  0xb7   :  { %v175_v24 = vmin.u32 %v130_v23, %v128_v22  ;;  %v158_v49 = vand.u32 3, %v157_v48 }
  0xb9   :  { %v132_v25 = vclz %v175_v24  ;;  %vm163_vm9 = vcmp.eq.s32.totalorder %v158_v49, 2  ;;  %vm160_vm10 = vcmp.eq.s32.totalorder %v158_v49, 0  ;;  %vm159_vm11 = vcmp.lt.s32.totalorder %v158_v49, 2 }
  0xbb   :  { %v176_v26 = vadd.s32 4294967294, %v132_v25 }
  0xbd   :  { %vm177_vm6 = vcmp.lt.s32.totalorder %v176_v26, 0 }
  0xbe   :  { %v135_v27 = vsel %vm177_vm6, 0, %v176_v26 }
  0xbf   :  { %v136_v30 = vsub.s32 32, %v135_v27  ;;  %v140_v31 = vsub.s32 4294967266, %v135_v27  ;;  %v137_v32 = vshll.u32 %v128_v22, %v135_v27 }
  0xc1   :  { %v138_v34 = vshrl.u32 %v120_v29, %v136_v30  ;;  %v141_v35 = vadd.s32 127, %v140_v31 }
  0xc3   :  { %v139_v36 = vor.u32 %v138_v34, %v137_v32  ;;  %v142_v37 = vshll.u32 %v141_v35, 23 }
  0xc5   :  { %v143_v38 = vor.u32 4788187, %v142_v37  ;;  %v146_v40 = vcvt.s32.f32 %v139_v36 }
  0xc7   :  { %v144_v39 = vand.u32 2147483647, %v143_v38 }
  0xc9   :  { %v147_v41 = vmul.f32 %v146_v40, %v144_v39 }
  0xcb   :  { %v148_v43 = vxor.u32 2147483648, %v147_v41 }
  0xcd   :  { %v149_v44 = vsel %vm66_vm7, %v148_v43, %v147_v41 }
  0xce   :  { %v152_v46 = vsel %vm65_vm8, %v240_v28, %v149_v44 }
  0xcf   :  { %197 = vcosq.f32 %v152_v46 }
  0xd0   :  { %199 = vsinq.f32 %v152_v46 }
  0xd9   :  { %v198_v50 = vpop.eup %197 }
  0xda   :  { %v200_v51 = vpop.eup %199  ;;  %v164_v52 = vxor.u32 2147483648, %v198_v50 }
  0xdb   :  { %v161_v53 = vxor.u32 2147483648, %v200_v51 }
  0xdc   :  { %v165_v54 = vsel %vm163_vm9, %v164_v52, %v200_v51 }
  0xdd   :  { %v162_v55 = vsel %vm160_vm10, %v198_v50, %v161_v53 }
  0xde   :  { %v166_v33 = vsel %vm159_vm11, %v162_v55, %v165_v54 }
  0xdf   :  { %v167_v56 = vsel %vm156_vm12, nan, %v166_v33 }
  0xe0   :  { %168 = vst [vmem:[%s267_s3] sm:$0xff] %v167_v56 }

</bundles_post_ra>
